<compile_context>
chip_gen: v5e
topology: v5e:2x2
jax: 0.10.0
libtpu: 0.0.40
codegen_flags: <defaults>
</compile_context>

<pallas_src>
import jax
import jax.numpy as jnp
from jax.experimental import pallas as pl
from jax.experimental.pallas import tpu as pltpu


def make_dct_matrix(n: int) -> jnp.ndarray:
    """DCT-II basis identical to get_dct_filter(n) in the PyTorch module."""
    k = jnp.arange(n, dtype=jnp.float32)[:, None]   # frequency index (rows)
    i = jnp.arange(n, dtype=jnp.float32)[None, :]   # input index (cols)
    base = jnp.cos(jnp.pi * (0.5 + i) * k / n) / jnp.sqrt(jnp.float32(n))
    scale = jnp.where(k != 0, jnp.sqrt(jnp.float32(2.0)), jnp.float32(1.0))
    return (base * scale).astype(jnp.float32)       # (n, n)


def _dct_channel_mix_kernel(x_ref, w_ref, o_ref):
    # x_ref: (TB, C, TP) input block, lane dim = 128-aligned spatial chunk
    # w_ref: (C, C) DCT basis, VMEM-resident (constant index_map)
    # o_ref: (TB, C, TP) f32 output block
    tb = x_ref.shape[0]
    w = w_ref[...]
    # Per-slice dots written straight into o_ref: no broadcasted W, no block temp.
    # tb is small (capped in _choose_tiles) so a static unroll is cheap.
    for b in range(tb):
        xb = x_ref[b].astype(jnp.float32)            # in-kernel cast (review item)
        o_ref[b] = jnp.dot(
            w, xb,
            preferred_element_type=jnp.float32,
            precision=jax.lax.Precision.HIGHEST,
        ).astype(o_ref.dtype)


def _tpu_profile():
    """Generation-aware (block_budget_bytes, vmem_limit_bytes, multi_tc)."""
    vmem = None
    try:
        info = pltpu.get_tpu_info()
        vmem = getattr(info, "vmem_capacity_bytes", None)
    except Exception:
        pass
    if vmem is not None and vmem > 96 * 1024 * 1024:
        # v5e / v6e class: 128 MiB VMEM, single TensorCore -> big blocks are safe.
        return 8 * 1024 * 1024, 48 * 1024 * 1024, False
    # v7x class (64 MiB VMEM/TC, 2 TCs) or unknown: smaller blocks, balance grid.
    return 4 * 1024 * 1024, 40 * 1024 * 1024, True


def _choose_tiles(batch, chans, spatial, budget_bytes, max_tb=32):
    """Pick (tb, tp). Grow the lane-dense spatial tile first; batch-tile only
    once tp covers the whole spatial extent. `spatial` must be a multiple of 128."""
    bytes_per = 4  # f32 output stream dominates the block footprint
    if chans * spatial * bytes_per <= budget_bytes:
        tp = spatial
    else:
        nblk = spatial // 128
        tp = 128
        for d in range(1, nblk + 1):
            if nblk % d == 0 and chans * d * 128 * bytes_per <= budget_bytes:
                tp = d * 128
    tb = 1
    if tp == spatial:
        cap = min(max_tb, max(1, budget_bytes // (chans * tp * bytes_per)))
        for d in range(1, batch + 1):
            if batch % d == 0 and d <= cap:
                tb = d
    return tb, tp


def _balance_even(batch, spatial, tb, tp):
    """v7x megacore: make the total parallel step count even so both TCs stay busy."""
    if ((batch // tb) * (spatial // tp)) % 2 == 0:
        return tb, tp
    # Prefer splitting the batch axis.
    for d in range(tb, 0, -1):
        if batch % d == 0 and (batch // d) % 2 == 0:
            return d, tp
    # Otherwise split the spatial axis (keep it 128-aligned).
    nsp = spatial // 128
    for d in range(tp // 128, 0, -1):
        if nsp % d == 0 and (nsp // d) % 2 == 0:
            return tb, d * 128
    return tb, tp  # both axes have odd block counts; nothing to do


def fast_dct_spatial_transform_y(x, weight=None):
    """x: (B, C, H, W) with C == height (1x1 conv requirement). Returns (B, C, H, W) f32."""
    B, C, H, W = x.shape
    if weight is None:
        weight = make_dct_matrix(C)
    assert weight.shape == (C, C), "1x1 conv requires in_channels == height"

    P = H * W
    x3 = x.reshape(B, C, P)                     # native dtype: no wrapper pre-cast
    Ppad = ((P + 127) // 128) * 128
    if Ppad != P:
        # Pad to a lane-dense multiple of 128 (unmasked stores, bounded VMEM blocks).
        x3 = jnp.pad(x3, ((0, 0), (0, 0), (0, Ppad - P)))

    budget, vmem_limit, multi_tc = _tpu_profile()
    tb, tp = _choose_tiles(B, C, Ppad, budget)
    if multi_tc:
        tb, tp = _balance_even(B, Ppad, tb, tp)
    grid = (B // tb, Ppad // tp)

    out3 = pl.pallas_call(
        _dct_channel_mix_kernel,
        out_shape=jax.ShapeDtypeStruct((B, C, Ppad), jnp.float32),
        grid=grid,
        in_specs=[
            pl.BlockSpec((tb, C, tp), lambda i, j: (i, 0, j)),
            pl.BlockSpec((C, C), lambda i, j: (0, 0)),   # weight stays VMEM-resident
        ],
        out_specs=pl.BlockSpec((tb, C, tp), lambda i, j: (i, 0, j)),
        compiler_params=pltpu.CompilerParams(
            dimension_semantics=("parallel", "parallel"),
            vmem_limit_bytes=vmem_limit,
        ),
    )(x3, weight.astype(jnp.float32))

    if Ppad != P:
        out3 = out3[:, :, :P]
    return out3.reshape(B, C, H, W)


if __name__ == "__main__":
    key = jax.random.PRNGKey(0)
    height = 16                         # module parameter; conv2d needs C == height
    B, C, H, W = 2, height, 16, 16
    x = jax.random.normal(key, (B, C, H, W), dtype=jnp.float32)

    out = fast_dct_spatial_transform_y(x)
    out = jax.block_until_ready(out)

    # Reference: F.conv2d(x, W[:, :, None, None]) == einsum('kc,bchw->bkhw', W, x)
    wy = make_dct_matrix(height)
    ref = jnp.einsum("kc,bchw->bkhw", wy, x, precision=jax.lax.Precision.HIGHEST)

    assert out.shape == (B, C, H, W)
    assert jnp.allclose(out, ref, atol=1e-4, rtol=1e-4)
    print("KERNEL_OK")
</pallas_src>

<mosaic_0001>
module attributes {stable_mosaic.version = 11 : i64} {
  func.func @_dct_channel_mix_kernel(%arg0: i32, %arg1: i32, %arg2: memref<1x16x256xf32, #tpu.memory_space<vmem>>, %arg3: memref<16x16xf32, #tpu.memory_space<vmem>>, %arg4: memref<1x16x256xf32, #tpu.memory_space<vmem>>) attributes {dimension_semantics = [#tpu.dimension_semantics<parallel>, #tpu.dimension_semantics<parallel>], iteration_bounds = array<i64: 2, 1>, scalar_prefetch = 0 : i64, scratch_operands = 0 : i64, tpu.core_type = #tpu.core_type<tc>, window_params = [{transform_indices = @transform_0, window_bounds = array<i64: 1, 16, 256>}, {pipeline_mode = #tpu.pipeline_mode<synchronous>, transform_indices = @transform_1, window_bounds = array<i64: 16, 16>}, {transform_indices = @transform_2, window_bounds = array<i64: 1, 16, 256>}]} {
    %c0 = arith.constant 0 : index
    %c0_0 = arith.constant 0 : index
    %0 = vector.load %arg3[%c0, %c0_0] : memref<16x16xf32, #tpu.memory_space<vmem>>, vector<16x16xf32>
    %c0_1 = arith.constant 0 : index
    %c0_2 = arith.constant 0 : index
    %c0_3 = arith.constant 0 : index
    %1 = vector.load %arg2[%c0_1, %c0_2, %c0_3] : memref<1x16x256xf32, #tpu.memory_space<vmem>>, vector<1x16x256xf32>
    %2 = vector.shape_cast %1 : vector<1x16x256xf32> to vector<16x256xf32>
    %cst = arith.constant dense<0.000000e+00> : vector<16x256xf32>
    %3 = tpu.matmul %0, %2, %cst {dimension_numbers = #tpu.dot_dimension_numbers<[1], [0], [0], [1], [0, 0, 1, 1], [], []>, precision = #tpu.contract_precision<fp32>} : vector<16x16xf32>, vector<16x256xf32>, vector<16x256xf32> -> vector<16x256xf32>
    %c0_4 = arith.constant 0 : index
    %c0_5 = arith.constant 0 : index
    %c0_6 = arith.constant 0 : index
    %4 = vector.load %arg4[%c0_4, %c0_5, %c0_6] : memref<1x16x256xf32, #tpu.memory_space<vmem>>, vector<1x16x256xf32>
    %5 = vector.shape_cast %4 : vector<1x16x256xf32> to vector<16x256xf32>
    %6 = vector.shape_cast %3 : vector<16x256xf32> to vector<1x16x256xf32>
    tpu.vector_store %arg4[%c0_4, %c0_5, %c0_6], %6 {strides = array<i32>} : memref<1x16x256xf32, #tpu.memory_space<vmem>>, vector<1x16x256xf32>,
    return
  }
  func.func @transform_0(%arg0: i32, %arg1: i32) -> (i32, i32, i32) {
    %c0_i32 = arith.constant 0 : i32
    %c0_i32_0 = arith.constant 0 : i32
    return %arg0, %c0_i32, %arg1 : i32, i32, i32
  }
  func.func @transform_1(%arg0: i32, %arg1: i32) -> (i32, i32) {
    %c0_i32 = arith.constant 0 : i32
    %c0_i32_0 = arith.constant 0 : i32
    %c0_i32_1 = arith.constant 0 : i32
    return %c0_i32, %c0_i32_0 : i32, i32
  }
  func.func @transform_2(%arg0: i32, %arg1: i32) -> (i32, i32, i32) {
    %c0_i32 = arith.constant 0 : i32
    %c0_i32_0 = arith.constant 0 : i32
    return %arg0, %c0_i32, %arg1 : i32, i32, i32
  }
}

</mosaic_0001>

<bundles_post_ra>
// kernel: tpu_custom_call.1
= control target key start
LH: loop header
LB: loop body
LE: loop exit
PB: predicated region body
PF: predicated region fallthrough
CT: control target
= control target key end

     0   :  { %7 = vsyncpa [#allocation3], 0  ;;  %s1159_s0 = inlined_call_operand.hbm [shape: f32[2,16,256], index: 0, kind: input, shape index: {}]   ;;  %s1160_s1 = inlined_call_operand.hbm [shape: f32[16,16], index: 1, kind: input, shape index: {}]   ;;  %s1161_s2 = inlined_call_operand.hbm [shape: f32[2,16,256], index: 2, kind: output, shape index: {}]  }
   0x1   :  { %9 = vsyncpa [#allocation3 + $0x1], 0 }
   0x2   :  { %10 = vsyncpa [#allocation6], 0 }
   0x3   :  { %11 = vsyncpa [#allocation4], 0 }
   0x4   :  { %13 = vsyncpa [#allocation4 + $0x1], 0  ;;  %s981_s9 = smov 0   ;;  %s983_s10 = smov 0  }
   0x5   :  { %s985_s11 = smov 0   ;;  %s987_s12 = smov 0  }
   0x6   :  { %s989_s13 = smov 0   ;;  %s991_s14 = smov 0  }
   0x7 LB: > { %s713_s15 = sadd.s32 4294967295, %s957_s14   ;;  %s714_s16 = sadd.s32 4294967294, %s957_s14   ;;  %s957_s14 = sphi %s991_s14, %s19_s14   ;;  %s953_s13 = sphi %s989_s13, %s1173_s13   ;;  %s949_s12 = sphi %s987_s12, %s1172_s12   ;;  %s945_s11 = sphi %s985_s11, %s1171_s11   ;;  %s941_s10 = sphi %s983_s10, %s1170_s10   ;;  %s937_s9 = sphi %s981_s9, %s1169_s9  }
   0x8   : > { %p53_p0 = scmp.ne.s32.totalorder %s941_s10, %s937_s9  ;;  %p1015_p1 = scmp.eq.s32.totalorder %s713_s15, 0 }
   0x9   : > { %p1019_p2 = scmp.eq.s32.totalorder %s713_s15, 1  ;;  %p106_p3 = scmp.eq.s32.totalorder %s714_s16, 1 }
   0xa   : > { %p1025_p4 = por %p1015_p1, %p53_p0  ;;  %p715_p5 = scmp.ge.s32.totalorder %s957_s14, 1 }
   0xb   : > { %p1030_p6 = por %p106_p3, %p53_p0  ;;  %p113_p7 = scmp.lt.s32.totalorder %s957_s14, 3 }
   0xc   : > { %s124_s23 = sshll.u32 %s1160_s1, 4  ;;  %s959_s25 = smov [#allocation5]   ;;  %s125_s23 = int_to_ptr.hbm [resolvable:$true] %s124_s23 }
   0xd   : > { %p1038_p8 = pnand %p715_p5, %p113_p7  ;;  %s126_s26 = sshll.u32 %s959_s25, 4  ;;  %s127_s26 = int_to_ptr.vmem [resolvable:$true] %s126_s26 }
   0xe   : > { %p717_p11 = scmp.ge.s32.totalorder %s957_s14, 2  ;;  %s960_s27 = smov 128  }
   0xf   : > { %p740_p9 = pneg %p1038_p8  ;;  %s961_s28 = smov 8  }
  0x10   : > { %s31_s29 = sadd.s32 1, %s953_s13  ;;  %s40_s30 = sadd.s32 1, %s945_s11 }
  0x11   : > { %p741_p10 = pnand %p740_p9, %p1015_p1  ;;  %p33_p12 = scmp.ge.s32.totalorder %s31_s29, 2 }
  0x12   : > { %p47_p13 = scmp.ne.s32.totalorder %s945_s11, %s941_s10  ;;  %p48_p0 = scmp.eq.s32.totalorder %s957_s14, 0 }
  0x13   : > { %743 = dma.hbm_to_vmem [thread:$0]  (!%p741_p10), %s125_s23, 256, %s127_s26, [#allocation6], %s960_s27, %s960_s27, %s961_s28  }
  0x14   : > { %s1175_s29 = smov (%p33_p12, %s31_s29), 0  ;;  %p1054_p3 = por %p48_p0, %p47_p13 }
  0x15   : > { %p1060_p5 = por %p1019_p2, %p47_p13  ;;  %s35_s5 = ssub.s32 %s953_s13, %s1175_s29 }
  0x16   : > { %p753_p7 = scmp.lt.s32.totalorder %s957_s14, 2  ;;  %p38_p9 = scmp.eq.s32.totalorder %s35_s5, 0 }
  0x17   : > { %s140_s6 = sand.u32 1, %s945_s11   ;;  %s730_s15 = sshll.u32 %s953_s13, 5 }
  0x18   : > { %s718_s7 = sshll.u32 %s140_s6, 5  ;;  %s151_s22 = scalar_lea.hbm %s1159_s0, %s730_s15 }
  0x19   : > { %s1069_s8 = scalar_select %p38_p9, %s945_s11, %s40_s30  }
  0x1a   : > { %s144_s23 = scalar_lea.vmem [#allocation2], %s718_s7  ;;  %s152_s18 = sshll.u32 %s151_s22, 4  ;;  %s153_s18 = int_to_ptr.hbm [resolvable:$true] %s152_s18 }
  0x1b   : > { %s154_s25 = sshll.u32 %s144_s23, 4  ;;  %p745_p2 = pnand %p753_p7, %p1054_p3  ;;  %s155_s25 = int_to_ptr.vmem [resolvable:$true] %s154_s25 }
  0x1c   : > { %s141_s26 = scalar_lea.sflag [#allocation3], %s140_s6  ;;  %s962_s27 = smov 256  }
  0x1d   : > { %s963_s28 = smov 16   ;;  %166 = sbr.rel (%p1038_p8) target bundleno = 228 (0xe4), region = 28 }
  0x1e   : > { %747 = dma.hbm_to_vmem [thread:$0]  (!%p745_p2), %s153_s18, 512, %s155_s25, %s141_s26, %s962_s27, %s962_s27, %s963_s28  }
  0x1f   : > { %s1080_s30 = sand.u32 (!%p1038_p8), 1, %s941_s10  }
  0x20   : > { %s722_s5 = sshll.u32 (!%p1038_p8), %s1080_s30, 5  ;;  %s169_s7 = scalar_lea.sflag (!%p1038_p8), [#allocation3], %s1080_s30 }
  0x21   : > { %s172_s15 = scalar_lea.vmem (!%p1038_p8), [#allocation2], %s722_s5 }
  0x22   : > { %924 = dma.done.wait (%p1025_p4), %s169_s7, 512  }
  0x23   : > { %926 = vsyncadd (%p1025_p4), %s169_s7, 4294966784 }
  0x24   : > { %928 = dma.done.wait (%p1015_p1), [#allocation6], 256  }
  0x25   : > { %930 = vsyncadd (%p1015_p1), [#allocation6], 4294967040  ;;  %vm207_vm0 = vcmask 130048   ;;  %v205_v0 = vld [vmem:[%s172_s15 + $0x10] sm:$0xff]  ;;  %v203_v1 = vld [vmem:[%s172_s15] sm:$0xff]  ;;  %s1114_s17 = scalar_lea.vmem [#allocation7], %s722_s5 }
  0x26   : > { %v201_v2 = vld [vmem:[#allocation5] sm:$0xff]  ;;  %v228_v3 = vand.u32 4294901760, %v205_v0  ;;  %v230_v4 = vand.u32 4294901760, %v203_v1  ;;  %v206_v6 = vld [vmem:[%s172_s15 + $0x18] sm:$0xff]  ;;  %v202_v7 = vld [vmem:[#allocation5 + $0x8] sm:$0xff]  ;;  %s731_s19 = sshll.u32 %s949_s12, 5 }
  0x27   : > { %v209_v5 = vsel %vm207_vm0, %v201_v2, 0  ;;  %v204_v8 = vld [vmem:[%s172_s15 + $0x8] sm:$0xff]  ;;  %v418_v10 = vand.u32 4294901760, %v206_v6  ;;  %v212_v11 = vsel %vm207_vm0, %v202_v7, 0  ;;  %s612_s6 = scalar_lea.hbm %s1161_s2, %s731_s19  ;;  %s613_s16 = sshll.u32 %s1114_s17, 4  ;;  %s614_s16 = int_to_ptr.vmem [resolvable:$true] %s613_s16 }
  0x28   : > { %v1094_v9 = vand.u32 4294901760, %v209_v5  ;;  %v420_v12 = vand.u32 4294901760, %v204_v8  ;;  %v264_v13 = vsub.f32 %v205_v0, %v228_v3  ;;  %330 = vmatpush.msra.mxu3 %v228_v3  ;;  %229 = vmatpush.msra.mxu0 %v228_v3  ;;  %v270_v14 = vsub.f32 %v203_v1, %v230_v4  ;;  %s615_s21 = sshll.u32 %s612_s6, 4  ;;  %s599_s12 = scalar_lea.sflag [#allocation4], %s1080_s30  ;;  %s616_s21 = int_to_ptr.hbm [resolvable:$true] %s615_s21 }
  0x29   : > { %v1096_v15 = vand.u32 4294901760, %v212_v11  ;;  %v454_v17 = vsub.f32 %v206_v6, %v418_v10  ;;  %s885_s22 = sshra.s32 %s616_s21, 4  ;;  %s891_s26 = scalar_lea.hbm %s1161_s2, 64  ;;  %s886_s22 = int_to_ptr.hbm [resolvable:$true] %s885_s22 }
  0x2a   : > { %v233_v16 = vsub.f32 %v209_v5, %v1094_v9  ;;  %v460_v18 = vsub.f32 %v204_v8, %v420_v12  ;;  %300 = vmatpush.msra.mxu2 %v264_v13  ;;  %332 = vmatpush.msra.mxu3 %v230_v4  ;;  %v265_v19 = vand.u32 4294901760, %v264_v13  ;;  %v271_v20 = vand.u32 4294901760, %v270_v14  ;;  %s887_s23 = scalar_lea.hbm %s886_s22, 32  ;;  %p892_p10 = scmp.lt.s32.totalorder %s886_s22, %s1161_s2 }
  0x2b   : > { %v241_v21 = vsub.f32 %v212_v11, %v1096_v15  ;;  %231 = vmatpush.msra.mxu0 %v230_v4  ;;  %v455_v23 = vand.u32 4294901760, %v454_v17  ;;  %p888_p1 = scmp.ne.s32.totalorder %s886_s22, %s887_s23  ;;  %p893_p12 = scmp.lt.s32.totalorder %s891_s26, %s887_s23 }
  0x2c   : > { %v234_v22 = vand.u32 4294901760, %v233_v16  ;;  %v461_v24 = vand.u32 4294901760, %v460_v18  ;;  %303 = vmatpush.msra.mxu2 %v270_v14  ;;  %v266_v25 = vsub.f32 %v264_v13, %v265_v19  ;;  %v272_v26 = vsub.f32 %v270_v14, %v271_v20 }
  0x2d   : > { %363 = vmatpush.msrb.mxu0 %v265_v19  ;;  %306 = vmatmul.f32.vlgmr.msra.gmra.mxu2 %v233_v16  ;;  %v456_v28 = vsub.f32 %v454_v17, %v455_v23  ;;  %v242_v29 = vand.u32 4294901760, %v241_v21  ;;  %p889_p4 = pnand %p888_p1, %p1060_p5  ;;  %p894_p13 = por %p893_p12, %p892_p10 }
  0x2e   : > { %336 = vmatmul.f32.vlgmr.msra.gmra.mxu3 %v234_v22  ;;  %v235_v27 = vsub.f32 %v233_v16, %v234_v22  ;;  %v462_v30 = vsub.f32 %v460_v18, %v461_v24  ;;  %419 = vmatpush.msrb.mxu2 %v418_v10  ;;  %v267_v31 = vand.u32 4294901760, %v266_v25  ;;  %v273_v32 = vand.u32 4294901760, %v272_v26 }
  0x2f   : > { %367 = vmatpush.msrb.mxu0 %v271_v20  ;;  %v457_v34 = vand.u32 4294901760, %v456_v28  ;;  %v243_v36 = vsub.f32 %v241_v21, %v242_v29  ;;  %p890_p8 = pneg %p889_p4 }
  0x30   : > { %v236_v33 = vand.u32 4294901760, %v235_v27  ;;  %v463_v35 = vand.u32 4294901760, %v462_v30  ;;  %268 = vmatpush.msra.mxu1 %v267_v31  ;;  %421 = vmatpush.msrb.mxu2 %v420_v12 }
  0x31   : > { %458 = vmatpush.msrb.mxu3 %v457_v34  ;;  %v244_v37 = vand.u32 4294901760, %v243_v36  ;;  %p895_p0 = pnand %p894_p13, %p890_p8 }
  0x32   : > { %237 = vmatmul.f32.vlgmr.msra.gmra.mxu0 %v236_v33  ;;  %274 = vmatpush.msra.mxu1 %v273_v32 }
  0x33   : > { %553 = vmatpush.msra.mxu2 %v455_v23  ;;  %276 = vmatmul.f32.vlgmr.msra.gmra.mxu1 %v1094_v9 }
  0x34   : > { %464 = vmatpush.msrb.mxu3 %v463_v35  ;;  %392 = vmatpush.msrb.mxu1 %v228_v3 }
  0x35   : > { %490 = vmatpush.msra.mxu0 %v454_v17  ;;  %311 = vmatmul.f32.gmra.mxu2 %v241_v21 }
  0x36   : > { %342 = vmatmul.f32.gmra.mxu3 %v242_v29  ;;  %394 = vmatpush.msrb.mxu1 %v230_v4 }
  0x37   : > { %582 = vmatpush.msra.mxu3 %v418_v10  ;;  %557 = vmatpush.msra.mxu2 %v461_v24 }
  0x38   : > { %520 = vmatpush.msra.mxu1 %v418_v10  ;;  %493 = vmatpush.msra.mxu0 %v460_v18 }
  0x39   : > { %584 = vmatpush.msra.mxu3 %v420_v12 }
  0x3a   : > { %245 = vmatmul.f32.gmra.mxu0 %v244_v37  ;;  %522 = vmatpush.msra.mxu1 %v420_v12 }
  0x3b   : > { %280 = vmatmul.f32.gmra.mxu1 %v1096_v15 }
  0x3d   : > { %427 = vmatmul.f32.vlgmr.msrb.gmra.mxu2 %v236_v33 }
  0x3e   : > { %466 = vmatmul.f32.vlgmr.msrb.gmra.mxu3 %v1094_v9 }
  0x42   : > { %369 = vmatmul.f32.vlgmr.msrb.gmra.mxu0 %v1094_v9 }
  0x43   : > { %396 = vmatmul.f32.vlgmr.msrb.gmra.mxu1 %v1094_v9 }
  0x45   : > { %435 = vmatmul.f32.gmra.mxu2 %v244_v37 }
  0x46   : > { %470 = vmatmul.f32.gmra.mxu3 %v1096_v15 }
  0x4a   : > { %373 = vmatmul.f32.gmra.mxu0 %v1096_v15 }
  0x4b   : > { %400 = vmatmul.f32.gmra.mxu1 %v1096_v15 }
  0x4d   : > { %559 = vmatmul.f32.vlgmr.msra.gmra.mxu2 %v1094_v9 }
  0x4e   : > { %586 = vmatmul.f32.vlgmr.msra.gmra.mxu3 %v1094_v9 }
  0x52   : > { %496 = vmatmul.f32.vlgmr.msra.gmra.mxu0 %v233_v16 }
  0x53   : > { %526 = vmatmul.f32.vlgmr.msra.gmra.mxu1 %v234_v22 }
  0x55   : > { %563 = vmatmul.f32.gmra.mxu2 %v1096_v15 }
  0x56   : > { %590 = vmatmul.f32.gmra.mxu3 %v1096_v15 }
  0x5a   : > { %501 = vmatmul.f32.gmra.mxu0 %v241_v21 }
  0x5b   : > { %532 = vmatmul.f32.gmra.mxu1 %v242_v29 }
  0xaf   : > { %v238_v38 = vpop.f32.mrf.mxu0 }
  0xb0   : > { %v277_v39 = vpop.f32.mrf.mxu1  ;;  %v307_v40 = vpop.f32.mrf.mxu2 }
  0xb1   : > { %v337_v41 = vpop.f32.mrf.mxu3  ;;  %v278_v42 = vadd.f32 %v277_v39, %v238_v38 }
  0xb3   : > { %v308_v46 = vadd.f32 %v307_v40, %v278_v42 }
  0xb5   : > { %v338_v48 = vadd.f32 %v337_v41, %v308_v46 }
  0xb7   : > { %v246_v43 = vpop.f32.mrf.mxu0 }
  0xb8   : > { %v281_v44 = vpop.f32.mrf.mxu1  ;;  %v312_v45 = vpop.f32.mrf.mxu2 }
  0xb9   : > { %v343_v47 = vpop.f32.mrf.mxu3  ;;  %v282_v49 = vadd.f32 %v281_v44, %v246_v43 }
  0xbb   : > { %v313_v54 = vadd.f32 %v312_v45, %v282_v49 }
  0xbd   : > { %v344_v57 = vadd.f32 %v343_v47, %v313_v54 }
  0xbf   : > { %v370_v50 = vpop.f32.mrf.mxu0 }
  0xc0   : > { %v371_v51 = vadd.f32 %v370_v50, %v338_v48  ;;  %v397_v52 = vpop.f32.mrf.mxu1  ;;  %v428_v53 = vpop.f32.mrf.mxu2 }
  0xc1   : > { %v467_v56 = vpop.f32.mrf.mxu3 }
  0xc2   : > { %v398_v55 = vadd.f32 %v397_v52, %v371_v51  ;;  %v468_v0 = vadd.f32 %v467_v56, %v428_v53 }
  0xc4   : > { %594 = vst [vmem:[%s1114_s17] sm:$0xff] %v398_v55 }
  0xc7   : > { %v374_v58 = vpop.f32.mrf.mxu0 }
  0xc8   : > { %v375_v59 = vadd.f32 %v374_v58, %v344_v57  ;;  %v401_v60 = vpop.f32.mrf.mxu1  ;;  %v436_v61 = vpop.f32.mrf.mxu2 }
  0xc9   : > { %v471_v63 = vpop.f32.mrf.mxu3 }
  0xca   : > { %v402_v62 = vadd.f32 %v401_v60, %v375_v59  ;;  %v472_v8 = vadd.f32 %v471_v63, %v436_v61 }
  0xcc   : > { %596 = vst [vmem:[%s1114_s17 + $0x10] sm:$0xff] %v402_v62 }
  0xcf   : > { %v497_v1 = vpop.f32.mrf.mxu0 }
  0xd0   : > { %v498_v2 = vadd.f32 %v497_v1, %v468_v0  ;;  %v527_v3 = vpop.f32.mrf.mxu1  ;;  %v560_v4 = vpop.f32.mrf.mxu2 }
  0xd1   : > { %v587_v6 = vpop.f32.mrf.mxu3 }
  0xd2   : > { %v528_v5 = vadd.f32 %v527_v3, %v498_v2 }
  0xd4   : > { %v561_v7 = vadd.f32 %v560_v4, %v528_v5 }
  0xd6   : > { %v588_v9 = vadd.f32 %v587_v6, %v561_v7 }
  0xd7   : > { %v502_v10 = vpop.f32.mrf.mxu0 }
  0xd8   : > { %595 = vst [vmem:[%s1114_s17 + $0x8] sm:$0xff] %v588_v9  ;;  %v503_v11 = vadd.f32 %v502_v10, %v472_v8  ;;  %v533_v12 = vpop.f32.mrf.mxu1  ;;  %v564_v13 = vpop.f32.mrf.mxu2 }
  0xd9   : > { %v591_v15 = vpop.f32.mrf.mxu3 }
  0xda   : > { %v534_v14 = vadd.f32 %v533_v12, %v503_v11 }
  0xdc   : > { %v565_v16 = vadd.f32 %v564_v13, %v534_v14 }
  0xde   : > { %v592_v17 = vadd.f32 %v591_v15, %v565_v16 }
  0xe0   : > { %597 = vst [vmem:[%s1114_s17 + $0x18] sm:$0xff] %v592_v17 }
  0xe1   : > { %898 = shalt.err (!%p895_p0)
}
  0xe2   : > { %s964_s30 = smov 256   ;;  %s965_s5 = smov 16  }
  0xe3   : > { %738 = dma.vmem_to_hbm [thread:$0]  (%p1060_p5), %s614_s16, 512, %s616_s21, %s599_s12, %s964_s30, %s964_s30, %s965_s5  }
  0xe4 PF: > { %s630_s7 = sand.u32 1, %s937_s9   ;;  %p749_p3 = pnand %p717_p11, %p1030_p6 }
  0xe5   : > { %s631_s15 = scalar_lea.sflag [#allocation4], %s630_s7 }
  0xe6   : > { %p750_p7 = pneg %p749_p3 }
  0xe8   : > { %932 = dma.done.wait (%p750_p7), %s631_s15, 512  }
  0xe9   : > { %934 = vsyncadd (%p750_p7), %s631_s15, 4294966784  ;;  %s19_s14 = sadd.s32 1, %s957_s14   ;;  %s1169_s9 = smov %s941_s10 }
  0xea   : > { %p16_p9 = scmp.ge.s32.totalorder %s19_s14, 4   ;;  %s1170_s10 = smov %s945_s11 }
  0xeb   : > { %s1171_s11 = smov %s1069_s8  ;;  %s1172_s12 = smov %s953_s13 }
  0xec   : > { %s1173_s13 = smov %s1175_s29  ;;  %18 = sbr.rel (!%p16_p9) target bundleno = 7 (0x7), region = 77 }
  0xf1   :  { %637 = vsyncpa [#allocation3], 1 }
  0xf2   :  { %639 = vsyncpa [#allocation3 + $0x1], 1 }
  0xf3   :  { %640 = vsyncpa [#allocation6], 1 }
  0xf4   :  { %641 = vsyncpa [#allocation4], 1 }
  0xf5   :  { %643 = vsyncpa [#allocation4 + $0x1], 1 }

</bundles_post_ra>
